<compile_context>
chip_gen: v7x
topology: tpu7x:2x2x1
jax: 0.10.0
libtpu: 0.0.40
codegen_flags: <defaults>
</compile_context>

<pallas_src>
import functools

import jax
import jax.numpy as jnp
from jax.experimental import pallas as pl
from jax.experimental.pallas import tpu as pltpu


# ------------------------- Pallas kernel -------------------------

def detect_level_kernel(x_ref, w_ref, b_ref, gxm_ref, gym_ref, anch_ref,
                        xym_ref, whm_ref, raw_ref, dec_ref, *, stride, nx, tn):
    # 1x1 conv as a transposed matmul: (na*no, cin) @ (cin, tn) -> (na*no, tn).
    raw = jnp.dot(w_ref[...], x_ref[...],
                  preferred_element_type=jnp.float32) + b_ref[...]
    raw_ref[...] = raw

    s = jax.nn.sigmoid(raw)                                   # exp on EUP

    # Grid (gx - 0.5, gy - 0.5) term generated in-kernel: no big DMA'd add array.
    j = pl.program_id(1)                                      # spatial tile index
    col = jax.lax.broadcasted_iota(jnp.int32, (1, tn), 1) + j * tn
    colf = col.astype(jnp.float32)
    gy = jnp.floor((colf + 0.5) * (1.0 / nx))                 # +0.5 guards fp rounding
    gx = colf - gy * nx
    grid_add = gxm_ref[...] * gx + gym_ref[...] * gy - 0.5    # (na*no, tn)

    xy = (s * 2.0 + grid_add) * stride
    wh = (s * 2.0) ** 2 * anch_ref[...]
    xym = xym_ref[...]
    whm = whm_ref[...]
    dec_ref[...] = s + xym * (xy - s) + whm * (wh - s)


def run_level(x3, w, b_col, gxm, gym, anch, xym, whm, stride, nx, tn):
    bs, cin, s_pad = x3.shape
    na_no = w.shape[0]
    kernel = functools.partial(detect_level_kernel,
                               stride=float(stride), nx=float(nx), tn=int(tn))
    const_spec = pl.BlockSpec((na_no, 1), lambda bi, j: (0, 0))
    raw, dec = pl.pallas_call(
        kernel,
        out_shape=(jax.ShapeDtypeStruct((bs, na_no, s_pad), jnp.float32),
                   jax.ShapeDtypeStruct((bs, na_no, s_pad), jnp.float32)),
        grid_spec=pltpu.PrefetchScalarGridSpec(
            num_scalar_prefetch=0,
            grid=(bs, s_pad // tn),
            in_specs=[
                pl.BlockSpec((pl.Squeezed(), cin, tn), lambda bi, j: (bi, 0, j)),  # x
                pl.BlockSpec((na_no, cin), lambda bi, j: (0, 0)),                  # conv weight
                const_spec,   # bias
                const_spec,   # gx row mask
                const_spec,   # gy row mask
                const_spec,   # anchor*stride per row
                const_spec,   # xy row mask
                const_spec,   # wh row mask
            ],
            out_specs=[
                pl.BlockSpec((pl.Squeezed(), na_no, tn), lambda bi, j: (bi, 0, j)),
                pl.BlockSpec((pl.Squeezed(), na_no, tn), lambda bi, j: (bi, 0, j)),
            ],
        ),
        compiler_params=pltpu.CompilerParams(
            dimension_semantics=("parallel", "parallel")),
    )(x3, w, b_col, gxm, gym, anch, xym, whm)
    return raw, dec


# ------------------------- glue (pure JAX) -------------------------

def choose_spatial_tile(s, max_tn=2048):
    """Spatial tile (lane) width and padded spatial extent."""
    if s <= max_tn:
        return s, s                       # whole level in one lane-dense tile
    tn = max_tn                           # multiple of 128
    s_pad = ((s + tn - 1) // tn) * tn     # ceil-divide: no tail rows dropped
    return tn, s_pad


def make_row_consts(anchors_i, stride_i, na, no):
    """Per-output-row decode constants, each shaped (na*no, 1)."""
    c = jnp.arange(na * no) % no
    gxm = (c == 0).astype(jnp.float32).reshape(-1, 1)
    gym = (c == 1).astype(jnp.float32).reshape(-1, 1)
    xym = (c < 2).astype(jnp.float32).reshape(-1, 1)
    whm = ((c >= 2) & (c < 4)).astype(jnp.float32).reshape(-1, 1)
    ag = anchors_i * stride_i                                  # (na, 2) anchor_grid values
    anch = jnp.zeros((na, no), jnp.float32).at[:, 2:4].set(ag).reshape(-1, 1)
    return gxm, gym, anch, xym, whm


def detect_forward(xs, params, anchors, strides, nc, na):
    """Inference-mode Detect.forward: returns (cat(z, 1), [x_i permuted])."""
    # TODO(synk): fuse the three levels into a single pallas_call (scalar-prefetched
    # per-level offsets / padded cin) so v7x can spread all levels over its 2 TCs.
    no = nc + 5
    z, x_out = [], []
    for i, x in enumerate(xs):
        bs, cin, ny, nx = x.shape
        s = ny * nx
        x3 = x.reshape(bs, cin, s)                       # pure reshape, no transpose
        tn, s_pad = choose_spatial_tile(s)
        if s_pad != s:
            x3 = jnp.pad(x3, ((0, 0), (0, 0), (0, s_pad - s)))
        w, b = params[i]                                 # (na*no, cin), (na*no,)
        gxm, gym, anch, xym, whm = make_row_consts(anchors[i], strides[i], na, no)
        raw, dec = run_level(x3, w, b.reshape(-1, 1), gxm, gym, anch, xym, whm,
                             strides[i], nx, tn)
        raw = raw[:, :, :s]
        dec = dec[:, :, :s]
        # (bs, na*no, ny*nx) -> (bs, na, ny, nx, no) == x[i].view(...).permute(0,1,3,4,2)
        raw5 = raw.reshape(bs, na, no, ny, nx).transpose(0, 1, 3, 4, 2)
        dec5 = dec.reshape(bs, na, no, ny, nx).transpose(0, 1, 3, 4, 2)
        x_out.append(raw5)
        z.append(dec5.reshape(bs, na * ny * nx, no))
    return jnp.concatenate(z, axis=1), x_out


def detect_forward_ref(xs, params, anchors, strides, nc, na):
    """Pure-JAX reference reproducing the PyTorch Detect.forward (inference)."""
    no = nc + 5
    z, x_out = [], []
    for i, x in enumerate(xs):
        bs, cin, ny, nx = x.shape
        w, b = params[i]                                 # (na*no, cin), (na*no,)
        conv = jnp.einsum("oc,bcyx->boyx", w, x) + b.reshape(1, -1, 1, 1)
        raw5 = conv.reshape(bs, na, no, ny, nx).transpose(0, 1, 3, 4, 2)
        x_out.append(raw5)
        gy = jnp.arange(ny, dtype=jnp.float32)
        gx = jnp.arange(nx, dtype=jnp.float32)
        yv, xv = jnp.meshgrid(gy, gx, indexing="ij")
        grid = (jnp.stack((xv, yv), axis=-1) - 0.5).reshape(1, 1, ny, nx, 2)
        anchor_grid = (anchors[i] * strides[i]).reshape(1, na, 1, 1, 2)
        s = jax.nn.sigmoid(raw5)
        xy = (s[..., 0:2] * 2 + grid) * strides[i]
        wh = (s[..., 2:4] * 2) ** 2 * anchor_grid
        y = jnp.concatenate((xy, wh, s[..., 4:]), axis=-1)
        z.append(y.reshape(bs, na * ny * nx, no))
    return jnp.concatenate(z, axis=1), x_out


# ------------------------- main -------------------------

if __name__ == "__main__":
    nc = 3                                  # small class count -> no = 8
    anchors_list = [[10, 13, 16, 30, 33, 23],
                    [30, 61, 62, 45, 59, 119],
                    [116, 90, 156, 198, 373, 326]]
    anchors = jnp.asarray(anchors_list, jnp.float32).reshape(3, -1, 2)  # (nl, na, 2)
    strides = [8.0, 16.0, 32.0]
    nl, na = anchors.shape[0], anchors.shape[1]
    no = nc + 5
    ch = (8, 16, 32)                        # input channels per level
    bs = 2
    spatial = [(16, 16), (8, 8), (4, 4)]    # (ny, nx) per level

    key = jax.random.PRNGKey(0)
    params = []
    xs = []
    for i in range(nl):
        key, kw, kb, kx = jax.random.split(key, 4)
        # Conv2d(ch[i], na*no, 1): weight (out_ch, in_ch), bias (out_ch,)
        w = jax.random.normal(kw, (na * no, ch[i]), jnp.float32) * 0.05
        b = jax.random.normal(kb, (na * no,), jnp.float32) * 0.05
        params.append((w, b))
        ny, nx = spatial[i]
        xs.append(jax.random.normal(kx, (bs, ch[i], ny, nx), jnp.float32))

    z, x_out = detect_forward(xs, params, anchors, strides, nc, na)
    jax.block_until_ready(z)
    for t in x_out:
        jax.block_until_ready(t)

    # sanity check against pure-JAX reference of the PyTorch semantics
    z_ref, x_ref = detect_forward_ref(xs, params, anchors, strides, nc, na)
    assert z.shape == (bs, na * sum(ny * nx for ny, nx in spatial), no)
    assert jnp.allclose(z, z_ref, rtol=1e-4, atol=1e-4)
    for a, r in zip(x_out, x_ref):
        assert jnp.allclose(a, r, rtol=1e-4, atol=1e-4)

    print("KERNEL_OK")
</pallas_src>

<mosaic_0001>
module attributes {stable_mosaic.version = 11 : i64} {
  func.func @detect_level_kernel(%arg0: i32, %arg1: i32, %arg2: memref<1x8x256xf32, #tpu.memory_space<vmem>>, %arg3: memref<24x8xf32, #tpu.memory_space<vmem>>, %arg4: memref<24x1xf32, #tpu.memory_space<vmem>>, %arg5: memref<24x1xf32, #tpu.memory_space<vmem>>, %arg6: memref<24x1xf32, #tpu.memory_space<vmem>>, %arg7: memref<24x1xf32, #tpu.memory_space<vmem>>, %arg8: memref<24x1xf32, #tpu.memory_space<vmem>>, %arg9: memref<24x1xf32, #tpu.memory_space<vmem>>, %arg10: memref<1x24x256xf32, #tpu.memory_space<vmem>>, %arg11: memref<1x24x256xf32, #tpu.memory_space<vmem>>) attributes {dimension_semantics = [#tpu.dimension_semantics<parallel>, #tpu.dimension_semantics<parallel>], iteration_bounds = array<i64: 2, 1>, scalar_prefetch = 0 : i64, scratch_operands = 0 : i64, tpu.core_type = #tpu.core_type<tc>, window_params = [{transform_indices = @transform_0, window_bounds = array<i64: 1, 8, 256>}, {pipeline_mode = #tpu.pipeline_mode<synchronous>, transform_indices = @transform_1, window_bounds = array<i64: 24, 8>}, {pipeline_mode = #tpu.pipeline_mode<synchronous>, transform_indices = @transform_2, window_bounds = array<i64: 24, 1>}, {pipeline_mode = #tpu.pipeline_mode<synchronous>, transform_indices = @transform_3, window_bounds = array<i64: 24, 1>}, {pipeline_mode = #tpu.pipeline_mode<synchronous>, transform_indices = @transform_4, window_bounds = array<i64: 24, 1>}, {pipeline_mode = #tpu.pipeline_mode<synchronous>, transform_indices = @transform_5, window_bounds = array<i64: 24, 1>}, {pipeline_mode = #tpu.pipeline_mode<synchronous>, transform_indices = @transform_6, window_bounds = array<i64: 24, 1>}, {pipeline_mode = #tpu.pipeline_mode<synchronous>, transform_indices = @transform_7, window_bounds = array<i64: 24, 1>}, {transform_indices = @transform_8, window_bounds = array<i64: 1, 24, 256>}, {transform_indices = @transform_9, window_bounds = array<i64: 1, 24, 256>}]} {
    %c0 = arith.constant 0 : index
    %c0_0 = arith.constant 0 : index
    %0 = vector.load %arg3[%c0, %c0_0] : memref<24x8xf32, #tpu.memory_space<vmem>>, vector<24x8xf32>
    %c0_1 = arith.constant 0 : index
    %c0_2 = arith.constant 0 : index
    %c0_3 = arith.constant 0 : index
    %1 = vector.load %arg2[%c0_1, %c0_2, %c0_3] : memref<1x8x256xf32, #tpu.memory_space<vmem>>, vector<1x8x256xf32>
    %2 = vector.shape_cast %1 : vector<1x8x256xf32> to vector<8x256xf32>
    %cst = arith.constant dense<0.000000e+00> : vector<24x256xf32>
    %3 = tpu.matmul %0, %2, %cst {dimension_numbers = #tpu.dot_dimension_numbers<[1], [0], [0], [1], [0, 0, 1, 1], [], []>} : vector<24x8xf32>, vector<8x256xf32>, vector<24x256xf32> -> vector<24x256xf32>
    %c0_4 = arith.constant 0 : index
    %c0_5 = arith.constant 0 : index
    %4 = vector.load %arg4[%c0_4, %c0_5] : memref<24x1xf32, #tpu.memory_space<vmem>>, vector<24x1xf32>
    %5 = vector.broadcast %4 : vector<24x1xf32> to vector<24x256xf32>
    %6 = arith.addf %3, %5 : vector<24x256xf32>
    %c0_6 = arith.constant 0 : index
    %c0_7 = arith.constant 0 : index
    %c0_8 = arith.constant 0 : index
    %7 = vector.load %arg10[%c0_6, %c0_7, %c0_8] : memref<1x24x256xf32, #tpu.memory_space<vmem>>, vector<1x24x256xf32>
    %8 = vector.shape_cast %7 : vector<1x24x256xf32> to vector<24x256xf32>
    %9 = vector.shape_cast %6 : vector<24x256xf32> to vector<1x24x256xf32>
    tpu.vector_store %arg10[%c0_6, %c0_7, %c0_8], %9 {strides = array<i32>} : memref<1x24x256xf32, #tpu.memory_space<vmem>>, vector<1x24x256xf32>,
    %10 = arith.negf %6 : vector<24x256xf32>
    %11 = math.exp %10 : vector<24x256xf32>
    %cst_9 = arith.constant 1.000000e+00 : f32
    %12 = vector.broadcast %cst_9 : f32 to vector<24x256xf32>
    %13 = arith.addf %12, %11 : vector<24x256xf32>
    %14 = arith.divf %12, %13 : vector<24x256xf32>
    %15 = tpu.iota {dimensions = array<i32: 1>} : vector<1x256xi32>
    %c256_i32 = arith.constant 256 : i32
    %16 = arith.muli %arg1, %c256_i32 : i32
    %17 = vector.broadcast %16 : i32 to vector<1x256xi32>
    %18 = arith.addi %15, %17 : vector<1x256xi32>
    %19 = arith.sitofp %18 : vector<1x256xi32> to vector<1x256xf32>
    %cst_10 = arith.constant 5.000000e-01 : f32
    %20 = vector.broadcast %cst_10 : f32 to vector<1x256xf32>
    %21 = arith.addf %19, %20 : vector<1x256xf32>
    %cst_11 = arith.constant 6.250000e-02 : f32
    %22 = vector.broadcast %cst_11 : f32 to vector<1x256xf32>
    %23 = arith.mulf %21, %22 : vector<1x256xf32>
    %24 = math.floor %23 : vector<1x256xf32>
    %cst_12 = arith.constant 1.600000e+01 : f32
    %25 = vector.broadcast %cst_12 : f32 to vector<1x256xf32>
    %26 = arith.mulf %24, %25 : vector<1x256xf32>
    %27 = arith.subf %19, %26 : vector<1x256xf32>
    %c0_13 = arith.constant 0 : index
    %c0_14 = arith.constant 0 : index
    %28 = vector.load %arg5[%c0_13, %c0_14] : memref<24x1xf32, #tpu.memory_space<vmem>>, vector<24x1xf32>
    %29 = vector.broadcast %28 : vector<24x1xf32> to vector<24x256xf32>
    %30 = vector.broadcast %27 : vector<1x256xf32> to vector<24x256xf32>
    %31 = arith.mulf %29, %30 : vector<24x256xf32>
    %c0_15 = arith.constant 0 : index
    %c0_16 = arith.constant 0 : index
    %32 = vector.load %arg6[%c0_15, %c0_16] : memref<24x1xf32, #tpu.memory_space<vmem>>, vector<24x1xf32>
    %33 = vector.broadcast %32 : vector<24x1xf32> to vector<24x256xf32>
    %34 = vector.broadcast %24 : vector<1x256xf32> to vector<24x256xf32>
    %35 = arith.mulf %33, %34 : vector<24x256xf32>
    %36 = arith.addf %31, %35 : vector<24x256xf32>
    %cst_17 = arith.constant 5.000000e-01 : f32
    %37 = vector.broadcast %cst_17 : f32 to vector<24x256xf32>
    %38 = arith.subf %36, %37 : vector<24x256xf32>
    %cst_18 = arith.constant 2.000000e+00 : f32
    %39 = vector.broadcast %cst_18 : f32 to vector<24x256xf32>
    %40 = arith.mulf %14, %39 : vector<24x256xf32>
    %41 = arith.addf %40, %38 : vector<24x256xf32>
    %cst_19 = arith.constant 8.000000e+00 : f32
    %42 = vector.broadcast %cst_19 : f32 to vector<24x256xf32>
    %43 = arith.mulf %41, %42 : vector<24x256xf32>
    %cst_20 = arith.constant 2.000000e+00 : f32
    %44 = vector.broadcast %cst_20 : f32 to vector<24x256xf32>
    %45 = arith.mulf %14, %44 : vector<24x256xf32>
    %46 = arith.mulf %45, %45 : vector<24x256xf32>
    %c0_21 = arith.constant 0 : index
    %c0_22 = arith.constant 0 : index
    %47 = vector.load %arg7[%c0_21, %c0_22] : memref<24x1xf32, #tpu.memory_space<vmem>>, vector<24x1xf32>
    %48 = vector.broadcast %47 : vector<24x1xf32> to vector<24x256xf32>
    %49 = arith.mulf %46, %48 : vector<24x256xf32>
    %c0_23 = arith.constant 0 : index
    %c0_24 = arith.constant 0 : index
    %50 = vector.load %arg8[%c0_23, %c0_24] : memref<24x1xf32, #tpu.memory_space<vmem>>, vector<24x1xf32>
    %c0_25 = arith.constant 0 : index
    %c0_26 = arith.constant 0 : index
    %51 = vector.load %arg9[%c0_25, %c0_26] : memref<24x1xf32, #tpu.memory_space<vmem>>, vector<24x1xf32>
    %52 = arith.subf %43, %14 : vector<24x256xf32>
    %53 = vector.broadcast %50 : vector<24x1xf32> to vector<24x256xf32>
    %54 = arith.mulf %53, %52 : vector<24x256xf32>
    %55 = arith.addf %14, %54 : vector<24x256xf32>
    %56 = arith.subf %49, %14 : vector<24x256xf32>
    %57 = vector.broadcast %51 : vector<24x1xf32> to vector<24x256xf32>
    %58 = arith.mulf %57, %56 : vector<24x256xf32>
    %59 = arith.addf %55, %58 : vector<24x256xf32>
    %c0_27 = arith.constant 0 : index
    %c0_28 = arith.constant 0 : index
    %c0_29 = arith.constant 0 : index
    %60 = vector.load %arg11[%c0_27, %c0_28, %c0_29] : memref<1x24x256xf32, #tpu.memory_space<vmem>>, vector<1x24x256xf32>
    %61 = vector.shape_cast %60 : vector<1x24x256xf32> to vector<24x256xf32>
    %62 = vector.shape_cast %59 : vector<24x256xf32> to vector<1x24x256xf32>
    tpu.vector_store %arg11[%c0_27, %c0_28, %c0_29], %62 {strides = array<i32>} : memref<1x24x256xf32, #tpu.memory_space<vmem>>, vector<1x24x256xf32>,
    return
  }
  func.func @transform_0(%arg0: i32, %arg1: i32) -> (i32, i32, i32) {
    %c0_i32 = arith.constant 0 : i32
    %c0_i32_0 = arith.constant 0 : i32
    return %arg0, %c0_i32, %arg1 : i32, i32, i32
  }
  func.func @transform_1(%arg0: i32, %arg1: i32) -> (i32, i32) {
    %c0_i32 = arith.constant 0 : i32
    %c0_i32_0 = arith.constant 0 : i32
    %c0_i32_1 = arith.constant 0 : i32
    return %c0_i32, %c0_i32_0 : i32, i32
  }
  func.func @transform_2(%arg0: i32, %arg1: i32) -> (i32, i32) {
    %c0_i32 = arith.constant 0 : i32
    %c0_i32_0 = arith.constant 0 : i32
    %c0_i32_1 = arith.constant 0 : i32
    return %c0_i32, %c0_i32_0 : i32, i32
  }
  func.func @transform_3(%arg0: i32, %arg1: i32) -> (i32, i32) {
    %c0_i32 = arith.constant 0 : i32
    %c0_i32_0 = arith.constant 0 : i32
    %c0_i32_1 = arith.constant 0 : i32
    return %c0_i32, %c0_i32_0 : i32, i32
  }
  func.func @transform_4(%arg0: i32, %arg1: i32) -> (i32, i32) {
    %c0_i32 = arith.constant 0 : i32
    %c0_i32_0 = arith.constant 0 : i32
    %c0_i32_1 = arith.constant 0 : i32
    return %c0_i32, %c0_i32_0 : i32, i32
  }
  func.func @transform_5(%arg0: i32, %arg1: i32) -> (i32, i32) {
    %c0_i32 = arith.constant 0 : i32
    %c0_i32_0 = arith.constant 0 : i32
    %c0_i32_1 = arith.constant 0 : i32
    return %c0_i32, %c0_i32_0 : i32, i32
  }
  func.func @transform_6(%arg0: i32, %arg1: i32) -> (i32, i32) {
    %c0_i32 = arith.constant 0 : i32
    %c0_i32_0 = arith.constant 0 : i32
    %c0_i32_1 = arith.constant 0 : i32
    return %c0_i32, %c0_i32_0 : i32, i32
  }
  func.func @transform_7(%arg0: i32, %arg1: i32) -> (i32, i32) {
    %c0_i32 = arith.constant 0 : i32
    %c0_i32_0 = arith.constant 0 : i32
    %c0_i32_1 = arith.constant 0 : i32
    return %c0_i32, %c0_i32_0 : i32, i32
  }
  func.func @transform_8(%arg0: i32, %arg1: i32) -> (i32, i32, i32) {
    %c0_i32 = arith.constant 0 : i32
    %c0_i32_0 = arith.constant 0 : i32
    return %arg0, %c0_i32, %arg1 : i32, i32, i32
  }
  func.func @transform_9(%arg0: i32, %arg1: i32) -> (i32, i32, i32) {
    %c0_i32 = arith.constant 0 : i32
    %c0_i32_0 = arith.constant 0 : i32
    return %arg0, %c0_i32, %arg1 : i32, i32, i32
  }
}

</mosaic_0001>

<bundles_post_ra>
// kernel: tpu_custom_call.1
= control target key start
LH: loop header
LB: loop body
LE: loop exit
PB: predicated region body
PF: predicated region fallthrough
CT: control target
= control target key end

     0   :  { %15 = vsyncpa [#allocation3], 0  ;;  %s1505_s0 = inlined_call_operand.vmem [shape: f32[2,8,256], index: 0, kind: input, shape index: {}]   ;;  %s1506_s1 = inlined_call_operand.vmem [shape: f32[24,8], index: 1, kind: input, shape index: {}]   ;;  %s1507_s2 = inlined_call_operand.vmem [shape: f32[24,1], index: 2, kind: input, shape index: {}]   ;;  %s1508_s3 = inlined_call_operand.vmem [shape: f32[24,1], index: 3, kind: input, shape index: {}]   ;;  %s1509_s4 = inlined_call_operand.vmem [shape: f32[24,1], index: 4, kind: input, shape index: {}]   ;;  %s1510_s5 = inlined_call_operand.vmem [shape: f32[24,1], index: 5, kind: input, shape index: {}]   ;;  %s1511_s6 = inlined_call_operand.vmem [shape: f32[24,1], index: 6, kind: input, shape index: {}]   ;;  %s1512_s7 = inlined_call_operand.vmem [shape: f32[24,1], index: 7, kind: input, shape index: {}]   ;;  %s1513_s8 = inlined_call_operand.hbm [shape: f32[2,24,256], index: 8, kind: output, shape index: {0}]   ;;  %s1514_s9 = inlined_call_operand.hbm [shape: f32[2,24,256], index: 9, kind: output, shape index: {1}]  }
   0x1   :  { %17 = vsyncpa [#allocation3 + $0x1], 0 }
   0x2   :  { %18 = vsyncpa [#allocation5], 0 }
   0x3   :  { %20 = vsyncpa [#allocation5 + $0x1], 0  ;;  %s1182_s30 = smov 0   ;;  %s1184_s10 = smov 0  }
   0x4   :  { %s1186_s11 = smov 0   ;;  %s1188_s12 = smov 0  }
   0x5   :  { %s1190_s13 = smov 0   ;;  %s1192_s14 = smov 0  }
   0x6 LB: > { %s892_s15 = sadd.s32 4294967295, %s1124_s14   ;;  %s893_s16 = sadd.s32 4294967294, %s1124_s14   ;;  %s1124_s14 = sphi %s1192_s14, %s26_s14   ;;  %s1120_s13 = sphi %s1190_s13, %s1530_s13   ;;  %s1116_s12 = sphi %s1188_s12, %s1529_s12   ;;  %s1112_s11 = sphi %s1186_s11, %s1528_s11   ;;  %s1108_s10 = sphi %s1184_s10, %s1527_s10   ;;  %s1104_s30 = sphi %s1182_s30, %s1526_s30  }
   0x7   : > { %s38_s17 = sadd.s32 1, %s1120_s13  ;;  %s222_s18 = sadd.s32 1, %s1112_s11 }
   0x8   : > { %p40_p0 = scmp.ge.s32.totalorder %s38_s17, 2  ;;  %p232_p1 = scmp.ne.s32.totalorder %s1112_s11, %s1108_s10 }
   0x9   : > { %p233_p2 = scmp.eq.s32.totalorder %s892_s15, 1  ;;  %p238_p3 = scmp.ne.s32.totalorder %s1108_s10, %s1104_s30 }
   0xa   : > { %s1532_s17 = smov (%p40_p0, %s38_s17), 0  ;;  %p239_p5 = scmp.eq.s32.totalorder %s893_s16, 1 }
   0xb   : > { %p1222_p4 = por %p233_p2, %p232_p1  ;;  %s217_s20 = ssub.s32 %s1120_s13, %s1532_s17 }
   0xc   : > { %p896_p6 = scmp.ge.s32.totalorder %s1124_s14, 1  ;;  %p220_p7 = scmp.eq.s32.totalorder %s217_s20, 0 }
   0xd   : > { %p1229_p8 = por %p239_p5, %p238_p3  ;;  %p319_p9 = scmp.lt.s32.totalorder %s1124_s14, 3 }
   0xe   : > { %s1235_s22 = scalar_select %p220_p7, %s1112_s11, %s222_s18  }
   0xf   : > { %p320_p10 = pnand %p896_p6, %p319_p9 }
  0x10   : > { %p365_p11 = scmp.lt.s32.totalorder (!%p320_p10), %s1116_s12, 1  ;;  %v1126_v0 = vmov (!%p320_p10), 0.0   ;;  %v381_v1 = vld [vmem:[%s1507_s2] sm:$0xff] (!%p320_p10)  ;;  %v383_v2 = vld [vmem:[%s1507_s2 + $0x10] sm:$0xff] (!%p320_p10)  ;;  %v1127_v3 = vmov (!%p320_p10), 0   ;;  %vm399_vm0 = vcmask (!%p320_p10), 64512   ;;  %v534_v25 = vlaneseq (!%p320_p10) }
  0x11   : > { %323 = sbr.rel (%p320_p10) target bundleno = 318 (0x13e), region = 52  ;;  %473 = vmatprep.mubr.f32.mxu0 (!%p320_p10), %v1126_v0  ;;  %479 = vmatprep.mubr.f32.mxu1 (!%p320_p10), %v1126_v0  ;;  %v376_v4 = vld [vmem:[%s1506_s1] sm:$0xff] (!%p320_p10)  ;;  %v377_v7 = vld [vmem:[%s1506_s1 + $0x8] sm:$0xff] (!%p320_p10)  ;;  %v378_v10 = vld [vmem:[%s1506_s1 + $0x10] sm:$0xff] (!%p320_p10)  ;;  %s1314_s26 = sand.u32 (!%p320_p10), 1, %s1108_s10  }
  0x12   : > { %988 = vset.pattern.permute.xlu0 (!%p320_p10), %v1127_v3  ;;  %989 = vset.pattern.permute.xlu1 (!%p320_p10), %v1127_v3  ;;  %v382_v8 = vld [vmem:[%s1507_s2 + $0x8] sm:$0xff] (!%p320_p10)  ;;  %v553_v9 = vld [vmem:[%s1508_s3] sm:$0xff] (!%p320_p10)  ;;  %v555_v12 = vld [vmem:[%s1508_s3 + $0x10] sm:$0xff] (!%p320_p10)  ;;  %v1308_v27 = vand.u32 (!%p320_p10), 127, %v534_v25  ;;  %s1515_s15 = smul.u32 (!%p320_p10), 768, %s1116_s12  ;;  %s1128_s25 = smov (!%p320_p10), [#allocation2]  }
  0x13   : > { %386 = vperm.xlu0 (!%p320_p10), %988, %v381_v1   ;;  %396 = vperm.xlu1 (!%p320_p10), %989, %v383_v2   ;;  %v554_v11 = vld [vmem:[%s1508_s3 + $0x8] sm:$0xff] (!%p320_p10)  ;;  %v577_v13 = vld [vmem:[%s1509_s4] sm:$0xff] (!%p320_p10)  ;;  %v579_v15 = vld [vmem:[%s1509_s4 + $0x10] sm:$0xff] (!%p320_p10) }
  0x14   : > { %v578_v14 = vld [vmem:[%s1509_s4 + $0x8] sm:$0xff] (!%p320_p10)  ;;  %v637_v16 = vld [vmem:[%s1510_s5] sm:$0xff] (!%p320_p10)  ;;  %v639_v18 = vld [vmem:[%s1510_s5 + $0x10] sm:$0xff] (!%p320_p10)  ;;  %v1311_v28 = vadd.s32 (!%p320_p10), 128, %v1308_v27  ;;  %v541_v31 = vcvt.s32.f32 (!%p320_p10), %v1308_v27  ;;  %s1346_s20 = scalar_lea.hbm (!%p320_p10), %s1513_s8, %s1515_s15 }
  0x15   : > { %v638_v17 = vld [vmem:[%s1510_s5 + $0x8] sm:$0xff] (!%p320_p10)  ;;  %v661_v19 = vld [vmem:[%s1511_s6] sm:$0xff] (!%p320_p10)  ;;  %v663_v21 = vld [vmem:[%s1511_s6 + $0x10] sm:$0xff] (!%p320_p10) }
  0x16   : > { %v662_v20 = vld [vmem:[%s1511_s6 + $0x8] sm:$0xff] (!%p320_p10)  ;;  %v664_v22 = vld [vmem:[%s1512_s7] sm:$0xff] (!%p320_p10)  ;;  %v666_v24 = vld [vmem:[%s1512_s7 + $0x10] sm:$0xff] (!%p320_p10)  ;;  %v542_v32 = vcvt.s32.f32 (!%p320_p10), %v1311_v28  ;;  %v543_v34 = vadd.f32 (!%p320_p10), 0.5, %v541_v31 }
  0x17   : > { %391 = vperm.xlu0 (!%p320_p10), %988, %v382_v8   ;;  %558 = vperm.xlu1 (!%p320_p10), %989, %v553_v9   ;;  %v665_v23 = vld [vmem:[%s1512_s7 + $0x8] sm:$0xff] (!%p320_p10) }
  0x18   : > { %s366_s27 = scalar_select %p365_p11, %s1116_s12, 1  ;;  %v544_v35 = vadd.f32 0.5, %v542_v32  ;;  %v545_v45 = vmul.f32 0.0625, %v543_v34 }
  0x1a   : > { %s918_s28 = sshll.u32 %s366_s27, 4  ;;  %s1516_s27 = smul.u32 48, %s1314_s26  ;;  %v546_v46 = vmul.f32 0.0625, %v544_v35  ;;  %v1348_v56 = vfloor.f32 %v545_v45 }
  0x1b   : > { %s372_s16 = scalar_lea.vmem %s1505_s0, %s918_s28  ;;  %563 = vperm.xlu0 %988, %v554_v11   ;;  %568 = vperm.xlu1 %989, %v555_v12  }
  0x1c   : > { %v380_v5 = vld [vmem:[%s372_s16 + $0x8] sm:$0xff]  ;;  %v379_v6 = vld [vmem:[%s372_s16] sm:$0xff]  ;;  %s1329_s28 = scalar_lea.vmem [#allocation2], %s1516_s27  ;;  %v1353_v59 = vfloor.f32 %v546_v46  ;;  %s1018_s16 = sshll.u32 %s1128_s25, 4  ;;  %s1019_s16 = int_to_ptr.vmem [resolvable:$false] %s1018_s16 }
  0x1d   : > { %409 = vmatprep.subr.mxu0 %v380_v5  ;;  %919 = vmatprep.subr.mxu1 %v380_v5  ;;  %s760_s29 = sshll.u32 %s1329_s28, 4  ;;  %s1020_s18 = scalar_lea.vmem %s1019_s16, 1536  ;;  %s1339_s29 = int_to_ptr.vmem [resolvable:$true] %s760_s29 }
  0x1e   : > { %410 = vmatpush1.msra.mxu0 %v379_v6  ;;  %920 = vmatpush1.msra.mxu1 %v379_v6  ;;  %s1014_s24 = scalar_lea.vmem %s1339_s29, 768  ;;  %p1021_p1 = scmp.lt.s32.totalorder %s1339_s29, %s1019_s16 }
  0x1f   : > { %899 = vmatmul.mubr.msk.f32.vlgmr.msra.gmra.mrb[0].mxu0 %vm399_vm0, %v376_v4  ;;  %900 = vmatmul.mubr.msk.f32.vlgmr.msra.gmra.mrb[0].mxu1 %vm399_vm0, %v377_v7  ;;  %p1015_p12 = scmp.ne.s32.totalorder %s1339_s29, %s1014_s24  ;;  %p1022_p2 = scmp.lt.s32.totalorder %s1020_s18, %s1014_s24 }
  0x20   : > { %485 = vmatprep.mubr.f32.mxu1 %v1126_v0  ;;  %582 = vperm.xlu0 %988, %v577_v13  }
  0x21   : > { %587 = vperm.xlu1 %989, %v578_v14   ;;  %p1016_p13 = pnand %p1015_p12, %p1222_p4  ;;  %p1023_p3 = por %p1022_p2, %p1021_p1 }
  0x23   : > { %901 = vmatmul.mubr.msk.f32.gmra.mrb[2].mxu1 %vm399_vm0, %v378_v10  ;;  %p1017_p0 = pneg %p1016_p13 }
  0x24   : > { %592 = vperm.xlu0 %988, %v579_v15  }
  0x25   : > { %642 = vperm.xlu1 %989, %v637_v16   ;;  %p1024_p5 = pnand %p1023_p3, %p1017_p0 }
  0x28   : > { %647 = vperm.xlu0 %988, %v638_v17  }
  0x29   : > { %652 = vperm.xlu1 %989, %v639_v18  }
  0x2c   : > { %675 = vperm.xlu0 %988, %v661_v19  }
  0x2d   : > { %680 = vperm.xlu1 %989, %v662_v20  }
  0x30   : > { %685 = vperm.xlu0 %988, %v663_v21  }
  0x31   : > { %708 = vperm.xlu1 %989, %v664_v22  }
  0x34   : > { %713 = vperm.xlu0 %988, %v665_v23  }
  0x35   : > { %718 = vperm.xlu1 %989, %v666_v24  }
  0x92   : > { %v387_v26 = vpop.permute.xlu0 %386  ;;  %v397_v29 = vpop.permute.xlu1 %396 }
  0x96   : > { %v392_v30 = vpop.permute.xlu0 %391  ;;  %v1319_v33 = vpop.permute.xlu1 %558 }
  0x9a   : > { %v1325_v36 = vpop.permute.xlu0 %563  ;;  %v1335_v49 = vpop.permute.xlu1 %568 }
  0x9f   : > { %v1350_v57 = vpop.permute.xlu0 %582 }
  0xf2   : > { %v475_v37 = vpop.f32.mrb[0].mxu0  ;;  %v481_v38 = vpop.f32.mrb[0].mxu1 }
  0xf3   : > { %v476_v39 = vadd.f32 %v475_v37, %v387_v26  ;;  %v482_v40 = vadd.f32 %v481_v38, %v392_v30  ;;  %v477_v41 = vpop.f32.mrb[1].mxu0  ;;  %v483_v42 = vpop.f32.mrb[1].mxu1 }
  0xf4   : > { %v478_v43 = vadd.f32 %v477_v41, %v387_v26  ;;  %v484_v44 = vadd.f32 %v483_v42, %v392_v30 }
  0xf5   : > { %492 = vst [vmem:[%s1329_s28] sm:$0xff] %v476_v39  ;;  %v902_v47 = vmul.f32 -1.442695, %v476_v39  ;;  %494 = vst [vmem:[%s1329_s28 + $0x10] sm:$0xff] %v482_v40  ;;  %v904_v48 = vmul.f32 -1.442695, %v482_v40 }
  0xf6   : > { %493 = vst [vmem:[%s1329_s28 + $0x8] sm:$0xff] %v478_v43  ;;  %v903_v50 = vmul.f32 -1.442695, %v478_v43  ;;  %495 = vst [vmem:[%s1329_s28 + $0x18] sm:$0xff] %v484_v44  ;;  %v905_v51 = vmul.f32 -1.442695, %v484_v44 }
  0xf7   : > { %v487_v52 = vpop.f32.mrb[2].mxu1  ;;  %990 = vpow2.f32 %v902_v47 }
  0xf8   : > { %v488_v53 = vadd.f32 %v487_v52, %v397_v29  ;;  %v489_v54 = vpop.f32.mrb[3].mxu1  ;;  %992 = vpow2.f32 %v904_v48 }
  0xf9   : > { %v490_v55 = vadd.f32 %v489_v54, %v397_v29  ;;  %994 = vpow2.f32 %v903_v50 }
  0xfa   : > { %496 = vst [vmem:[%s1329_s28 + $0x20] sm:$0xff] %v488_v53  ;;  %v906_v58 = vmul.f32 -1.442695, %v488_v53  ;;  %996 = vpow2.f32 %v905_v51 }
  0xfb   : > { %497 = vst [vmem:[%s1329_s28 + $0x28] sm:$0xff] %v490_v55  ;;  %v907_v60 = vmul.f32 -1.442695, %v490_v55 }
  0xfc   : > { %998 = vpow2.f32 %v906_v58 }
  0xfd   : > { %1027 = shalt.err (!%p1024_p5)
}
  0xfe   : > { %s1028_s28 = scalar_lea.hbm %s1346_s20, 768  ;;  %s1032_s25 = scalar_lea.hbm %s1513_s8, 1536 }
  0xff   : > { %p1029_p6 = scmp.ne.s32.totalorder %s1346_s20, %s1028_s28  ;;  %p1033_p10 = scmp.lt.u32.totalorder %s1346_s20, %s1513_s8 }
 0x100   : > { %p1034_p11 = scmp.lt.u32.totalorder %s1032_s25, %s1028_s28  ;;  %p1036_p13 = scmp.lt.u32.totalorder %s1028_s28, %s1346_s20 }
 0x101   : > { %p1030_p7 = pnand %p1029_p6, %p1222_p4 }
 0x102   : > { %p1035_p12 = por %p1034_p11, %p1033_p10 }
 0x103   : > { %p1031_p9 = pneg %p1030_p7 }
 0x104   : > { %p1037_p0 = por %p1036_p13, %p1035_p12 }
 0x106   : > { %p1038_p1 = pnand %p1037_p0, %p1031_p9 }
 0x108   : > { %1041 = shalt.err (!%p1038_p1)
}
 0x109   : > { %s1517_s24 = smov 256   ;;  %s1518_s18 = smov 16   ;;  %v588_v61 = vpop.permute.xlu1 %587  ;;  %1000 = vpow2.f32 %v907_v60  ;;  %v549_v62 = vmul.f32 16.0, %v1348_v56  ;;  %v550_v63 = vmul.f32 16.0, %v1353_v59  ;;  %v593_v0 = vpop.permute.xlu0 %592  ;;  %v595_v20 = vmul.f32 %v1350_v57, %v1348_v56 }
 0x10a   : > { %s1521_s27 = scalar_lea.sflag [#allocation3], %s1314_s26  ;;  %v991_v1 = vpop.eup %990  ;;  %v596_v22 = vmul.f32 %v1350_v57, %v1353_v59  ;;  %v597_v23 = vmul.f32 %v588_v61, %v1348_v56  ;;  %v598_v24 = vmul.f32 %v588_v61, %v1353_v59  ;;  %v599_v27 = vmul.f32 %v593_v0, %v1348_v56  ;;  %s1523_s23 = smul.u32 768, %s1116_s12 }
 0x10b   : > { %924 = dma.vmem_to_hbm [thread:$0]  (%p1222_p4), %s1339_s29, 768, %s1346_s20, %s1521_s27, %s1517_s24, %s1517_s24, %s1518_s18   ;;  %v551_v2 = vsub.f32 %v541_v31, %v549_v62  ;;  %v993_v3 = vpop.eup %992  ;;  %v552_v4 = vsub.f32 %v542_v32, %v550_v63  ;;  %v516_v6 = vadd.f32 1.0, %v991_v1  ;;  %v600_v29 = vmul.f32 %v593_v0, %v1353_v59 }
 0x10c   : > { %v995_v7 = vpop.eup %994  ;;  %v518_v8 = vadd.f32 1.0, %v993_v3  ;;  %s1522_s29 = smul.u32 48, %s1314_s26  ;;  %s1452_s16 = scalar_lea.hbm %s1514_s9, %s1523_s23 }
 0x10d   : > { %v1389_v5 = vpop.permute.xlu1 %642  ;;  %v997_v9 = vpop.eup %996  ;;  %1002 = vrcp.f32 %v516_v6  ;;  %v517_v10 = vadd.f32 1.0, %v995_v7  ;;  %v571_v12 = vmul.f32 %v1319_v33, %v551_v2  ;;  %v572_v16 = vmul.f32 %v1319_v33, %v552_v4  ;;  %s745_s27 = scalar_lea.sflag [#allocation5], %s1314_s26  ;;  %s1131_s24 = smov [#allocation4]  }
 0x10e   : > { %v999_v11 = vpop.eup %998  ;;  %v1392_v13 = vpop.permute.xlu0 %647  ;;  %1004 = vrcp.f32 %v518_v8  ;;  %v519_v14 = vadd.f32 1.0, %v997_v9  ;;  %v573_v17 = vmul.f32 %v1325_v36, %v551_v2  ;;  %v574_v19 = vmul.f32 %v1325_v36, %v552_v4  ;;  %s363_s15 = scalar_lea.vmem [#allocation4], %s1522_s29  ;;  %s1046_s12 = sshll.u32 %s1131_s24, 4  ;;  %s1047_s12 = int_to_ptr.vmem [resolvable:$false] %s1046_s12 }
 0x10f   : > { %1006 = vrcp.f32 %v517_v10  ;;  %v520_v18 = vadd.f32 1.0, %v999_v11  ;;  %v575_v26 = vmul.f32 %v1335_v49, %v551_v2  ;;  %v576_v28 = vmul.f32 %v1335_v49, %v552_v4  ;;  %s778_s20 = sshll.u32 %s363_s15, 4  ;;  %s1048_s18 = scalar_lea.vmem %s1047_s12, 1536  ;;  %s1454_s20 = int_to_ptr.vmem [resolvable:$true] %s778_s20 }
 0x110   : > { %1008 = vrcp.f32 %v519_v14  ;;  %v601_v30 = vadd.f32 %v595_v20, %v571_v12  ;;  %v602_v32 = vadd.f32 %v596_v22, %v572_v16  ;;  %v603_v33 = vadd.f32 %v597_v23, %v573_v17  ;;  %s1042_s29 = scalar_lea.vmem %s1454_s20, 768  ;;  %p1049_p6 = scmp.lt.s32.totalorder %s1454_s20, %s1047_s12 }
 0x111   : > { %v1403_v25 = vpop.permute.xlu1 %652  ;;  %1010 = vrcp.f32 %v520_v18  ;;  %v604_v34 = vadd.f32 %v598_v24, %v574_v19  ;;  %v605_v35 = vadd.f32 %v599_v27, %v575_v26  ;;  %v606_v37 = vadd.f32 %v600_v29, %v576_v28  ;;  %p1043_p2 = scmp.ne.s32.totalorder %s1454_s20, %s1042_s29  ;;  %p1050_p7 = scmp.lt.s32.totalorder %s1048_s18, %s1042_s29 }
 0x112   : > { %v1409_v31 = vpop.permute.xlu0 %675  ;;  %v908_v40 = vadd.f32 -0.5, %v601_v30  ;;  %v909_v43 = vadd.f32 -0.5, %v602_v32  ;;  %v910_v44 = vadd.f32 -0.5, %v603_v33 }
 0x113   : > { %v1001_v15 = vpop.eup %1000  ;;  %v911_v45 = vadd.f32 -0.5, %v604_v34  ;;  %v912_v48 = vadd.f32 -0.5, %v605_v35  ;;  %v913_v54 = vadd.f32 -0.5, %v606_v37  ;;  %p1044_p3 = pnand %p1043_p2, %p1222_p4  ;;  %p1051_p9 = por %p1050_p7, %p1049_p6 }
 0x114   : > { %v521_v21 = vadd.f32 1.0, %v1001_v15 }
 0x115   : > { %v1411_v38 = vpop.permute.xlu1 %680  ;;  %p1045_p5 = pneg %p1044_p3 }
 0x116   : > { %1012 = vrcp.f32 %v521_v21  ;;  %v1417_v49 = vpop.permute.xlu0 %685 }
 0x117   : > { %v1003_v36 = vpop.eup %1002  ;;  %p1052_p10 = pnand %p1051_p9, %p1045_p5 }
 0x118   : > { %v1005_v39 = vpop.eup %1004  ;;  %v613_v41 = vmul.f32 2.0, %v1003_v36 }
 0x119   : > { %v1413_v42 = vpop.eup %1006  ;;  %v615_v46 = vmul.f32 2.0, %v1005_v39  ;;  %v709_v63 = vpop.permute.xlu1 %708 }
 0x11a   : > { %v1415_v47 = vpop.eup %1008  ;;  %v619_v50 = vadd.f32 %v908_v40, %v613_v41  ;;  %v631_v51 = vmul.f32 %v613_v41, %v613_v41  ;;  %v614_v52 = vmul.f32 2.0, %v1413_v42  ;;  %v714_v16 = vpop.permute.xlu0 %713 }
 0x11b   : > { %v1011_v53 = vpop.eup %1010  ;;  %v621_v55 = vadd.f32 %v910_v44, %v615_v46  ;;  %v633_v56 = vmul.f32 %v615_v46, %v615_v46  ;;  %v616_v57 = vmul.f32 2.0, %v1415_v47 }
 0x11c   : > { %v625_v59 = vmul.f32 8.0, %v619_v50  ;;  %v655_v60 = vmul.f32 %v1389_v5, %v631_v51  ;;  %v617_v61 = vmul.f32 2.0, %v1011_v53  ;;  %v620_v62 = vadd.f32 %v909_v43, %v614_v52 }
 0x11d   : > { %v627_v0 = vmul.f32 8.0, %v621_v55  ;;  %v657_v1 = vmul.f32 %v1392_v13, %v633_v56  ;;  %v622_v3 = vadd.f32 %v911_v45, %v616_v57  ;;  %v632_v27 = vmul.f32 %v614_v52, %v614_v52  ;;  %v719_v29 = vpop.permute.xlu1 %718 }
 0x11e   : > { %v667_v4 = vsub.f32 %v625_v59, %v1003_v36  ;;  %v700_v6 = vsub.f32 %v655_v60, %v1003_v36  ;;  %v623_v7 = vadd.f32 %v912_v48, %v617_v61  ;;  %v635_v8 = vmul.f32 %v617_v61, %v617_v61 }
 0x11f   : > { %v669_v9 = vsub.f32 %v627_v0, %v1005_v39  ;;  %v702_v10 = vsub.f32 %v657_v1, %v1005_v39  ;;  %v626_v12 = vmul.f32 8.0, %v620_v62  ;;  %v628_v21 = vmul.f32 8.0, %v622_v3 }
 0x120   : > { %v1421_v58 = vpop.eup %1012  ;;  %v688_v14 = vmul.f32 %v1409_v31, %v667_v4  ;;  %v721_v15 = vmul.f32 %v709_v63, %v700_v6  ;;  %v629_v17 = vmul.f32 8.0, %v623_v7  ;;  %v659_v18 = vmul.f32 %v1403_v25, %v635_v8 }
 0x121   : > { %v618_v2 = vmul.f32 2.0, %v1421_v58  ;;  %v690_v19 = vmul.f32 %v1411_v38, %v669_v9  ;;  %v723_v20 = vmul.f32 %v714_v16, %v702_v10  ;;  %v634_v30 = vmul.f32 %v616_v57, %v616_v57 }
 0x122   : > { %v694_v23 = vadd.f32 %v1003_v36, %v688_v14  ;;  %v671_v24 = vsub.f32 %v629_v17, %v1011_v53  ;;  %v704_v26 = vsub.f32 %v659_v18, %v1011_v53  ;;  %v668_v33 = vsub.f32 %v626_v12, %v1413_v42 }
 0x123   : > { %v624_v11 = vadd.f32 %v913_v54, %v618_v2  ;;  %v696_v28 = vadd.f32 %v1005_v39, %v690_v19  ;;  %v636_v32 = vmul.f32 %v618_v2, %v618_v2  ;;  %v656_v40 = vmul.f32 %v1389_v5, %v632_v27 }
 0x124   : > { %v727_v34 = vadd.f32 %v721_v15, %v694_v23  ;;  %v692_v35 = vmul.f32 %v1417_v49, %v671_v24  ;;  %v725_v37 = vmul.f32 %v719_v29, %v704_v26  ;;  %v658_v43 = vmul.f32 %v1392_v13, %v634_v30 }
 0x125   : > { %v630_v22 = vmul.f32 8.0, %v624_v11  ;;  %v729_v41 = vadd.f32 %v723_v20, %v696_v28  ;;  %v660_v36 = vmul.f32 %v1403_v25, %v636_v32  ;;  %v670_v44 = vsub.f32 %v628_v21, %v1415_v47 }
 0x126   : > { %733 = vst [vmem:[%s363_s15] sm:$0xff] %v727_v34  ;;  %v698_v39 = vadd.f32 %v1011_v53, %v692_v35  ;;  %v689_v46 = vmul.f32 %v1409_v31, %v668_v33  ;;  %v701_v48 = vsub.f32 %v656_v40, %v1413_v42  ;;  %v703_v50 = vsub.f32 %v658_v43, %v1415_v47 }
 0x127   : > { %v672_v45 = vsub.f32 %v630_v22, %v1421_v58  ;;  %735 = vst [vmem:[%s363_s15 + $0x10] sm:$0xff] %v729_v41  ;;  %v691_v5 = vmul.f32 %v1411_v38, %v670_v44  ;;  %v705_v13 = vsub.f32 %v660_v36, %v1421_v58 }
 0x128   : > { %v731_v25 = vadd.f32 %v725_v37, %v698_v39  ;;  %v695_v52 = vadd.f32 %v1413_v42, %v689_v46  ;;  %v722_v53 = vmul.f32 %v709_v63, %v701_v48  ;;  %v724_v31 = vmul.f32 %v714_v16, %v703_v50 }
 0x129   : > { %v693_v51 = vmul.f32 %v1417_v49, %v672_v45  ;;  %v697_v54 = vadd.f32 %v1415_v47, %v691_v5  ;;  %v726_v55 = vmul.f32 %v719_v29, %v705_v13 }
 0x12a   : > { %737 = vst [vmem:[%s363_s15 + $0x20] sm:$0xff] %v731_v25  ;;  %v728_v56 = vadd.f32 %v722_v53, %v695_v52 }
 0x12b   : > { %v699_v38 = vadd.f32 %v1421_v58, %v693_v51  ;;  %v730_v57 = vadd.f32 %v724_v31, %v697_v54 }
 0x12c   : > { %734 = vst [vmem:[%s363_s15 + $0x8] sm:$0xff] %v728_v56 }
 0x12d   : > { %v732_v59 = vadd.f32 %v726_v55, %v699_v38  ;;  %736 = vst [vmem:[%s363_s15 + $0x18] sm:$0xff] %v730_v57 }
 0x12f   : > { %738 = vst [vmem:[%s363_s15 + $0x28] sm:$0xff] %v732_v59 }
 0x130   : > { %1055 = shalt.err (!%p1052_p10)
}
 0x131   : > { %s1056_s15 = scalar_lea.hbm %s1452_s16, 768  ;;  %s1060_s24 = scalar_lea.hbm %s1514_s9, 1536 }
 0x132   : > { %p1057_p11 = scmp.ne.s32.totalorder %s1452_s16, %s1056_s15  ;;  %p1061_p0 = scmp.lt.u32.totalorder %s1452_s16, %s1514_s9 }
 0x133   : > { %p1062_p1 = scmp.lt.u32.totalorder %s1060_s24, %s1056_s15  ;;  %p1064_p3 = scmp.lt.u32.totalorder %s1056_s15, %s1452_s16 }
 0x134   : > { %p1058_p12 = pnand %p1057_p11, %p1222_p4 }
 0x135   : > { %p1063_p2 = por %p1062_p1, %p1061_p0 }
 0x136   : > { %p1059_p13 = pneg %p1058_p12 }
 0x137   : > { %p1065_p5 = por %p1064_p3, %p1063_p2 }
 0x139   : > { %p1066_p6 = pnand %p1065_p5, %p1059_p13 }
 0x13b   : > { %1069 = shalt.err (!%p1066_p6)
}
 0x13c   : > { %s1524_s18 = smov 16   ;;  %s1525_s29 = smov 256  }
 0x13d   : > { %925 = dma.vmem_to_hbm [thread:$0]  (%p1222_p4), %s1454_s20, 768, %s1452_s16, %s745_s27, %s1525_s29, %s1525_s29, %s1524_s18  }
 0x13e PF: > { %p935_p7 = scmp.ge.s32.totalorder %s1124_s14, 2  ;;  %s793_s23 = sand.u32 1, %s1104_s30  }
 0x13f   : > { %s794_s15 = scalar_lea.sflag [#allocation3], %s793_s23 }
 0x140   : > { %p929_p9 = pnand %p935_p7, %p1229_p8 }
 0x142   : > { %1095 = dma.done.wait (!%p929_p9), %s794_s15, 768  }
 0x143   : > { %1097 = vsyncadd (!%p929_p9), %s794_s15, 4294966528  ;;  %s803_s19 = scalar_lea.sflag [#allocation5], %s793_s23 }
 0x144   : > { %1099 = dma.done.wait (!%p929_p9), %s803_s19, 768  }
 0x145   : > { %1101 = vsyncadd (!%p929_p9), %s803_s19, 4294966528  ;;  %s26_s14 = sadd.s32 1, %s1124_s14   ;;  %s1526_s30 = smov %s1108_s10 }
 0x146   : > { %p23_p10 = scmp.ge.s32.totalorder %s26_s14, 4   ;;  %s1527_s10 = smov %s1112_s11 }
 0x147   : > { %s1528_s11 = smov %s1235_s22  ;;  %s1529_s12 = smov %s1120_s13 }
 0x148   : > { %s1530_s13 = smov %s1532_s17  ;;  %25 = sbr.rel (!%p23_p10) target bundleno = 6 (0x6), region = 104 }
 0x14f   :  { %808 = vsyncpa [#allocation3], 1 }
 0x150   :  { %810 = vsyncpa [#allocation3 + $0x1], 1 }
 0x151   :  { %811 = vsyncpa [#allocation5], 1 }
 0x152   :  { %813 = vsyncpa [#allocation5 + $0x1], 1 }

</bundles_post_ra>
